<compile_context>
chip_gen: v7x
topology: tpu7x:2x2x1
jax: 0.10.0
libtpu: 0.0.40
codegen_flags: <defaults>
</compile_context>

<pallas_src>
import math
import functools

import jax
import jax.numpy as jnp
from jax.experimental import pallas as pl
from jax.experimental.pallas import tpu as pltpu


def _mha_kernel(x_ref, wq_ref, bq_ref, wk_ref, wv_ref, bv_ref, wo_ref, bo_ref,
                o_ref, k_sc, v_sc, acc_ref, *, q_tile, compute_dtype):
    h = pl.program_id(1)
    qi = pl.program_id(2)

    # --- K/V projection: once per (batch, head), reused across all q tiles. ---
    @pl.when(qi == 0)
    def _project_kv():
        xkv = x_ref[0]                                                      # (S, D) bf16
        k = jnp.dot(xkv, wk_ref[0], preferred_element_type=jnp.float32)     # (S, hd) f32
        v = jnp.dot(xkv, wv_ref[0], preferred_element_type=jnp.float32) + bv_ref[0]
        k_sc[...] = k.astype(compute_dtype)
        v_sc[...] = v.astype(compute_dtype)

    row0 = pl.multiple_of(qi * q_tile, q_tile)
    xq = x_ref[0, pl.ds(row0, q_tile), :]                                   # (tq, D) bf16

    # Q projection; 1/sqrt(hd) and the bias scaling are pre-folded on the host.
    q = jnp.dot(xq, wq_ref[0], preferred_element_type=jnp.float32) + bq_ref[0]   # (tq, hd) f32

    # Scores: q @ k^T (contract minor dims of both; no transposed copy of k).
    s = jax.lax.dot_general(q.astype(compute_dtype), k_sc[...],
                            dimension_numbers=(((1,), (1,)), ((), ())),
                            preferred_element_type=jnp.float32)             # (tq, S) f32

    # Numerically stable softmax in f32; normalization deferred past the PV matmul.
    s = s - jnp.max(s, axis=-1, keepdims=True)
    p = jnp.exp(s)
    denom = jnp.sum(p, axis=-1, keepdims=True)
    ctx = jnp.dot(p.astype(compute_dtype), v_sc[...],
                  preferred_element_type=jnp.float32)                        # (tq, hd) f32
    ctx = ctx * pl.reciprocal(denom, approx=True)

    # Output projection, accumulated over heads into the resident f32 slab.
    contrib = jnp.dot(ctx.astype(compute_dtype), wo_ref[0],
                      preferred_element_type=jnp.float32)                    # (tq, D) f32

    @pl.when(h == 0)
    def _init():
        acc_ref[pl.ds(row0, q_tile), :] = contrib

    @pl.when(h > 0)
    def _accumulate():
        acc_ref[pl.ds(row0, q_tile), :] += contrib

    @pl.when(h == pl.num_programs(1) - 1)
    def _finalize():
        o_ref[0, pl.ds(row0, q_tile), :] = (
            acc_ref[pl.ds(row0, q_tile), :] + bo_ref[...]).astype(o_ref.dtype)


def _vmem_capacity_bytes():
    try:
        return int(pltpu.get_tpu_info().vmem_capacity_bytes)
    except Exception:
        return 64 * 1024 * 1024       # conservative fallback (v7x per-core VMEM)


def multi_head_attention(x, params, num_heads, *, q_tile=None,
                         compute_dtype=jnp.bfloat16):
    """x: (B, S, D) float32. params: nn.Linear-convention weights (D, D) / biases (1, D)."""
    B, S, D = x.shape
    H = num_heads
    hd = D // H
    assert H * hd == D, "d_model must be divisible by num_heads"

    vmem_cap = _vmem_capacity_bytes()

    # Per-generation tile choice: bigger q tiles on 128 MiB parts (v5e/v6e), 256 on v7x.
    if q_tile is None:
        target = 512 if vmem_cap >= 96 * 1024 * 1024 else 256
        if S <= target:
            q_tile = S
        else:
            cands = [t for t in range(8, target + 1, 8) if S % t == 0]
            q_tile = max(cands) if cands else S
    assert S % q_tile == 0
    nq = S // q_tile

    scale = 1.0 / math.sqrt(hd)

    # nn.Linear weights are (out, in); pre-transpose to (in, out) and pre-split per head.
    def split_cols(w):                                               # (D, D) -> (H, D, hd)
        return jnp.transpose(jnp.reshape(w.T, (D, H, hd)), (1, 0, 2))

    wq_h = (split_cols(params["wq"]) * scale).astype(compute_dtype)          # (H, D, hd)
    wk_h = split_cols(params["wk"]).astype(compute_dtype)                    # (H, D, hd)
    wv_h = split_cols(params["wv"]).astype(compute_dtype)                    # (H, D, hd)
    wo_h = jnp.reshape(params["wo"].T, (H, hd, D)).astype(compute_dtype)     # (H, hd, D)

    bq_h = (jnp.reshape(params["bq"], (H, 1, hd)) * scale).astype(jnp.float32)  # (H, 1, hd)
    bv_h = jnp.reshape(params["bv"], (H, 1, hd)).astype(jnp.float32)            # (H, 1, hd)
    # K bias dropped on purpose: softmax is exactly invariant to the per-row shift q.bk.
    bo = params["bo"].astype(jnp.float32)                                        # (1, D)

    x_c = x.astype(compute_dtype)    # cast once on the host: halves x HBM/VMEM traffic

    kernel = functools.partial(_mha_kernel, q_tile=q_tile, compute_dtype=compute_dtype)

    # Cost estimate for the work actually done under this grid order (K/V projected once
    # per (b, h); weights streamed once per (b, h); x streamed once per batch).
    flops = int(2 * B * S * D * (4 * D + 2 * S))
    transcendentals = int(B * H * S * S)
    bytes_accessed = int(B * S * D * 2                      # x (bf16), once per batch
                         + B * S * D * x.dtype.itemsize     # output
                         + 8 * B * D * D)                   # per-head bf16 weights, once per (b, h)

    vmem_limit = min(int(vmem_cap * 0.85), 100 * 1024 * 1024)

    return pl.pallas_call(
        kernel,
        out_shape=jax.ShapeDtypeStruct((B, S, D), x.dtype),
        grid_spec=pltpu.PrefetchScalarGridSpec(
            num_scalar_prefetch=0,
            grid=(B, H, nq),                      # q-tile innermost: weights/KV reused across it
            in_specs=[
                pl.BlockSpec((1, S, D),  lambda b, h, qi: (b, 0, 0)),   # x (bf16), resident per b
                pl.BlockSpec((1, D, hd), lambda b, h, qi: (h, 0, 0)),   # Wq[h] (scale folded)
                pl.BlockSpec((1, 1, hd), lambda b, h, qi: (h, 0, 0)),   # bq[h] (scale folded)
                pl.BlockSpec((1, D, hd), lambda b, h, qi: (h, 0, 0)),   # Wk[h]
                pl.BlockSpec((1, D, hd), lambda b, h, qi: (h, 0, 0)),   # Wv[h]
                pl.BlockSpec((1, 1, hd), lambda b, h, qi: (h, 0, 0)),   # bv[h]
                pl.BlockSpec((1, hd, D), lambda b, h, qi: (h, 0, 0)),   # Wo rows for head h
                pl.BlockSpec((1, D),     lambda b, h, qi: (0, 0)),      # bo
            ],
            out_specs=pl.BlockSpec((1, S, D), lambda b, h, qi: (b, 0, 0)),
            scratch_shapes=[
                pltpu.VMEM((S, hd), compute_dtype),    # K[h]  (computed once per (b, h))
                pltpu.VMEM((S, hd), compute_dtype),    # V[h]  (computed once per (b, h))
                pltpu.VMEM((S, D), jnp.float32),       # over-heads output accumulator
            ],
        ),
        compiler_params=pltpu.CompilerParams(
            # Only the batch axis is safely parallel: the head axis is the output
            # reduction and the q-tile axis reuses the per-(b, h) K/V scratch.
            dimension_semantics=("parallel", "arbitrary", "arbitrary"),
            vmem_limit_bytes=vmem_limit,
        ),
        cost_estimate=pl.CostEstimate(flops=flops, transcendentals=transcendentals,
                                      bytes_accessed=bytes_accessed),
    )(x_c, wq_h, bq_h, wk_h, wv_h, bv_h, wo_h, bo)


def _reference(x, params, num_heads):
    """Pure-JAX f32 reference mirroring the PyTorch forward (eval mode, mask=None)."""
    B, S, D = x.shape
    hd = D // num_heads

    def lin(t, w, b):
        return t @ w.T + b[0]

    q = lin(x, params["wq"], params["bq"]).reshape(B, S, num_heads, hd).transpose(0, 2, 1, 3)
    k = lin(x, params["wk"], params["bk"]).reshape(B, S, num_heads, hd).transpose(0, 2, 1, 3)
    v = lin(x, params["wv"], params["bv"]).reshape(B, S, num_heads, hd).transpose(0, 2, 1, 3)
    scores = jnp.einsum("bhqd,bhkd->bhqk", q, k) / math.sqrt(hd)
    attn = jax.nn.softmax(scores, axis=-1)
    ctx = jnp.einsum("bhqk,bhkd->bhqd", attn, v).transpose(0, 2, 1, 3).reshape(B, S, D)
    return lin(ctx, params["wo"], params["bo"])


if __name__ == "__main__":
    B, S, D, H = 2, 8, 32, 4

    key = jax.random.PRNGKey(0)
    keys = jax.random.split(key, 9)

    # Deterministic nn.Linear-like init (uniform with bound 1/sqrt(fan_in)).
    bound = 1.0 / math.sqrt(D)

    def u(k, shape):
        return jax.random.uniform(k, shape, jnp.float32, -bound, bound)

    params = {
        "wq": u(keys[0], (D, D)), "bq": u(keys[1], (1, D)),
        "wk": u(keys[2], (D, D)), "bk": u(keys[3], (1, D)),
        "wv": u(keys[4], (D, D)), "bv": u(keys[5], (1, D)),
        "wo": u(keys[6], (D, D)), "bo": u(keys[7], (1, D)),
    }
    x = jax.random.normal(keys[8], (B, S, D), jnp.float32)

    out = jax.block_until_ready(multi_head_attention(x, params, num_heads=H))
    ref = _reference(x, params, num_heads=H)

    assert out.shape == (B, S, D)
    # Matmul operands are bf16 with f32 accumulation -> mixed-precision tolerance vs f32 ref.
    assert jnp.allclose(out, ref, atol=5e-2, rtol=5e-2), "mismatch vs reference"

    print("KERNEL_OK")
</pallas_src>

<mosaic_0001>
module attributes {stable_mosaic.version = 11 : i64} {
  func.func @_mha_kernel(%arg0: i32, %arg1: i32, %arg2: i32, %arg3: memref<1x8x32xbf16, #tpu.memory_space<vmem>>, %arg4: memref<1x32x8xbf16, #tpu.memory_space<vmem>>, %arg5: memref<1x1x8xf32, #tpu.memory_space<vmem>>, %arg6: memref<1x32x8xbf16, #tpu.memory_space<vmem>>, %arg7: memref<1x32x8xbf16, #tpu.memory_space<vmem>>, %arg8: memref<1x1x8xf32, #tpu.memory_space<vmem>>, %arg9: memref<1x8x32xbf16, #tpu.memory_space<vmem>>, %arg10: memref<1x32xf32, #tpu.memory_space<vmem>>, %arg11: memref<1x8x32xf32, #tpu.memory_space<vmem>>, %arg12: memref<8x8xbf16, #tpu.memory_space<vmem>>, %arg13: memref<8x8xbf16, #tpu.memory_space<vmem>>, %arg14: memref<8x32xf32, #tpu.memory_space<vmem>>) attributes {dimension_semantics = [#tpu.dimension_semantics<parallel>, #tpu.dimension_semantics<arbitrary>, #tpu.dimension_semantics<arbitrary>], iteration_bounds = array<i64: 2, 4, 1>, scalar_prefetch = 0 : i64, scratch_operands = 3 : i64, tpu.core_type = #tpu.core_type<tc>, window_params = [{transform_indices = @transform_0, window_bounds = array<i64: 1, 8, 32>}, {transform_indices = @transform_1, window_bounds = array<i64: 1, 32, 8>}, {transform_indices = @transform_2, window_bounds = array<i64: 1, 1, 8>}, {transform_indices = @transform_3, window_bounds = array<i64: 1, 32, 8>}, {transform_indices = @transform_4, window_bounds = array<i64: 1, 32, 8>}, {transform_indices = @transform_5, window_bounds = array<i64: 1, 1, 8>}, {transform_indices = @transform_6, window_bounds = array<i64: 1, 8, 32>}, {pipeline_mode = #tpu.pipeline_mode<synchronous>, transform_indices = @transform_7, window_bounds = array<i64: 1, 32>}, {transform_indices = @transform_8, window_bounds = array<i64: 1, 8, 32>}]} {
    %c0_i32 = arith.constant 0 : i32
    %0 = arith.cmpi eq, %arg2, %c0_i32 : i32
    %1 = arith.extui %0 : i1 to i32
    %c0_i32_0 = arith.constant 0 : i32
    %2 = arith.cmpi ne, %1, %c0_i32_0 : i32
    scf.if %2 {
      %c0_25 = arith.constant 0 : index
      %c0_26 = arith.constant 0 : index
      %c0_27 = arith.constant 0 : index
      %44 = vector.load %arg3[%c0_25, %c0_26, %c0_27] : memref<1x8x32xbf16, #tpu.memory_space<vmem>>, vector<1x8x32xbf16>
      %45 = vector.shape_cast %44 : vector<1x8x32xbf16> to vector<8x32xbf16>
      %c0_28 = arith.constant 0 : index
      %c0_29 = arith.constant 0 : index
      %c0_30 = arith.constant 0 : index
      %46 = vector.load %arg6[%c0_28, %c0_29, %c0_30] : memref<1x32x8xbf16, #tpu.memory_space<vmem>>, vector<1x32x8xbf16>
      %47 = vector.shape_cast %46 : vector<1x32x8xbf16> to vector<32x8xbf16>
      %cst_31 = arith.constant dense<0.000000e+00> : vector<8x8xf32>
      %48 = tpu.matmul %45, %47, %cst_31 {dimension_numbers = #tpu.dot_dimension_numbers<[1], [0], [0], [1], [0, 0, 1, 1], [], []>} : vector<8x32xbf16>, vector<32x8xbf16>, vector<8x8xf32> -> vector<8x8xf32>
      %c0_32 = arith.constant 0 : index
      %c0_33 = arith.constant 0 : index
      %c0_34 = arith.constant 0 : index
      %49 = vector.load %arg7[%c0_32, %c0_33, %c0_34] : memref<1x32x8xbf16, #tpu.memory_space<vmem>>, vector<1x32x8xbf16>
      %50 = vector.shape_cast %49 : vector<1x32x8xbf16> to vector<32x8xbf16>
      %cst_35 = arith.constant dense<0.000000e+00> : vector<8x8xf32>
      %51 = tpu.matmul %45, %50, %cst_35 {dimension_numbers = #tpu.dot_dimension_numbers<[1], [0], [0], [1], [0, 0, 1, 1], [], []>} : vector<8x32xbf16>, vector<32x8xbf16>, vector<8x8xf32> -> vector<8x8xf32>
      %c0_36 = arith.constant 0 : index
      %c0_37 = arith.constant 0 : index
      %c0_38 = arith.constant 0 : index
      %52 = vector.load %arg8[%c0_36, %c0_37, %c0_38] : memref<1x1x8xf32, #tpu.memory_space<vmem>>, vector<1x1x8xf32>
      %53 = vector.shape_cast %52 : vector<1x1x8xf32> to vector<1x8xf32>
      %54 = vector.broadcast %53 : vector<1x8xf32> to vector<8x8xf32>
      %55 = arith.addf %51, %54 : vector<8x8xf32>
      %56 = arith.truncf %48 : vector<8x8xf32> to vector<8x8xbf16>
      %c0_39 = arith.constant 0 : index
      %c0_40 = arith.constant 0 : index
      %57 = vector.load %arg12[%c0_39, %c0_40] : memref<8x8xbf16, #tpu.memory_space<vmem>>, vector<8x8xbf16>
      tpu.vector_store %arg12[%c0_39, %c0_40], %56 {strides = array<i32>} : memref<8x8xbf16, #tpu.memory_space<vmem>>, vector<8x8xbf16>,
      %58 = arith.truncf %55 : vector<8x8xf32> to vector<8x8xbf16>
      %c0_41 = arith.constant 0 : index
      %c0_42 = arith.constant 0 : index
      %59 = vector.load %arg13[%c0_41, %c0_42] : memref<8x8xbf16, #tpu.memory_space<vmem>>, vector<8x8xbf16>
      tpu.vector_store %arg13[%c0_41, %c0_42], %58 {strides = array<i32>} : memref<8x8xbf16, #tpu.memory_space<vmem>>, vector<8x8xbf16>,
    } else {
    }
    %c8_i32 = arith.constant 8 : i32
    %3 = arith.muli %arg2, %c8_i32 : i32
    %4 = tpu.assume_multiple %3, 8 : i32
    %c0 = arith.constant 0 : index
    %5 = arith.index_cast %4 : i32 to index
    %c0_1 = arith.constant 0 : index
    %6 = vector.load %arg3[%c0, %5, %c0_1] : memref<1x8x32xbf16, #tpu.memory_space<vmem>>, vector<1x8x32xbf16>
    %7 = vector.shape_cast %6 : vector<1x8x32xbf16> to vector<8x32xbf16>
    %c0_2 = arith.constant 0 : index
    %c0_3 = arith.constant 0 : index
    %c0_4 = arith.constant 0 : index
    %8 = vector.load %arg4[%c0_2, %c0_3, %c0_4] : memref<1x32x8xbf16, #tpu.memory_space<vmem>>, vector<1x32x8xbf16>
    %9 = vector.shape_cast %8 : vector<1x32x8xbf16> to vector<32x8xbf16>
    %cst = arith.constant dense<0.000000e+00> : vector<8x8xf32>
    %10 = tpu.matmul %7, %9, %cst {dimension_numbers = #tpu.dot_dimension_numbers<[1], [0], [0], [1], [0, 0, 1, 1], [], []>} : vector<8x32xbf16>, vector<32x8xbf16>, vector<8x8xf32> -> vector<8x8xf32>
    %c0_5 = arith.constant 0 : index
    %c0_6 = arith.constant 0 : index
    %c0_7 = arith.constant 0 : index
    %11 = vector.load %arg5[%c0_5, %c0_6, %c0_7] : memref<1x1x8xf32, #tpu.memory_space<vmem>>, vector<1x1x8xf32>
    %12 = vector.shape_cast %11 : vector<1x1x8xf32> to vector<1x8xf32>
    %13 = vector.broadcast %12 : vector<1x8xf32> to vector<8x8xf32>
    %14 = arith.addf %10, %13 : vector<8x8xf32>
    %15 = arith.truncf %14 : vector<8x8xf32> to vector<8x8xbf16>
    %c0_8 = arith.constant 0 : index
    %c0_9 = arith.constant 0 : index
    %16 = vector.load %arg12[%c0_8, %c0_9] : memref<8x8xbf16, #tpu.memory_space<vmem>>, vector<8x8xbf16>
    %cst_10 = arith.constant dense<0.000000e+00> : vector<8x8xf32>
    %17 = tpu.matmul %15, %16, %cst_10 {dimension_numbers = #tpu.dot_dimension_numbers<[1], [1], [0], [0], [0, 0, 1, 0], [], []>} : vector<8x8xbf16>, vector<8x8xbf16>, vector<8x8xf32> -> vector<8x8xf32>
    %cst_11 = arith.constant dense<0xFF800000> : vector<8xf32>
    %18 = vector.multi_reduction <maximumf>, %17, %cst_11 [1] : vector<8x8xf32> to vector<8xf32>
    %19 = vector.shape_cast %18 : vector<8xf32> to vector<8x1xf32>
    %20 = vector.broadcast %19 : vector<8x1xf32> to vector<8x8xf32>
    %21 = arith.subf %17, %20 : vector<8x8xf32>
    %22 = math.exp %21 : vector<8x8xf32>
    %cst_12 = arith.constant dense<0.000000e+00> : vector<8xf32>
    %23 = vector.multi_reduction <add>, %22, %cst_12 [1] : vector<8x8xf32> to vector<8xf32>
    %24 = vector.shape_cast %23 : vector<8xf32> to vector<8x1xf32>
    %25 = arith.truncf %22 : vector<8x8xf32> to vector<8x8xbf16>
    %c0_13 = arith.constant 0 : index
    %c0_14 = arith.constant 0 : index
    %26 = vector.load %arg13[%c0_13, %c0_14] : memref<8x8xbf16, #tpu.memory_space<vmem>>, vector<8x8xbf16>
    %cst_15 = arith.constant dense<0.000000e+00> : vector<8x8xf32>
    %27 = tpu.matmul %25, %26, %cst_15 {dimension_numbers = #tpu.dot_dimension_numbers<[1], [0], [0], [1], [0, 0, 1, 1], [], []>} : vector<8x8xbf16>, vector<8x8xbf16>, vector<8x8xf32> -> vector<8x8xf32>
    %28 = tpu.reciprocal %24 {approx = true} : vector<8x1xf32> -> vector<8x1xf32>
    %29 = vector.broadcast %28 : vector<8x1xf32> to vector<8x8xf32>
    %30 = arith.mulf %27, %29 : vector<8x8xf32>
    %31 = arith.truncf %30 : vector<8x8xf32> to vector<8x8xbf16>
    %c0_16 = arith.constant 0 : index
    %c0_17 = arith.constant 0 : index
    %c0_18 = arith.constant 0 : index
    %32 = vector.load %arg9[%c0_16, %c0_17, %c0_18] : memref<1x8x32xbf16, #tpu.memory_space<vmem>>, vector<1x8x32xbf16>
    %33 = vector.shape_cast %32 : vector<1x8x32xbf16> to vector<8x32xbf16>
    %cst_19 = arith.constant dense<0.000000e+00> : vector<8x32xf32>
    %34 = tpu.matmul %31, %33, %cst_19 {dimension_numbers = #tpu.dot_dimension_numbers<[1], [0], [0], [1], [0, 0, 1, 1], [], []>} : vector<8x8xbf16>, vector<8x32xbf16>, vector<8x32xf32> -> vector<8x32xf32>
    %c0_i32_20 = arith.constant 0 : i32
    %35 = arith.cmpi eq, %arg1, %c0_i32_20 : i32
    %36 = arith.extui %35 : i1 to i32
    %c0_i32_21 = arith.constant 0 : i32
    %37 = arith.cmpi ne, %36, %c0_i32_21 : i32
    scf.if %37 {
      %44 = arith.index_cast %4 : i32 to index
      %c0_25 = arith.constant 0 : index
      %45 = vector.load %arg14[%44, %c0_25] : memref<8x32xf32, #tpu.memory_space<vmem>>, vector<8x32xf32>
      tpu.vector_store %arg14[%44, %c0_25], %34 {strides = array<i32>} : memref<8x32xf32, #tpu.memory_space<vmem>>, vector<8x32xf32>,
    } else {
    }
    %c0_i32_22 = arith.constant 0 : i32
    %38 = arith.cmpi sgt, %arg1, %c0_i32_22 : i32
    %39 = arith.extui %38 : i1 to i32
    %c0_i32_23 = arith.constant 0 : i32
    %40 = arith.cmpi ne, %39, %c0_i32_23 : i32
    scf.if %40 {
      %44 = arith.index_cast %4 : i32 to index
      %c0_25 = arith.constant 0 : index
      %45 = vector.load %arg14[%44, %c0_25] : memref<8x32xf32, #tpu.memory_space<vmem>>, vector<8x32xf32>
      %46 = arith.addf %45, %34 : vector<8x32xf32>
      %47 = arith.index_cast %4 : i32 to index
      %c0_26 = arith.constant 0 : index
      %48 = vector.load %arg14[%47, %c0_26] : memref<8x32xf32, #tpu.memory_space<vmem>>, vector<8x32xf32>
      tpu.vector_store %arg14[%47, %c0_26], %46 {strides = array<i32>} : memref<8x32xf32, #tpu.memory_space<vmem>>, vector<8x32xf32>,
    } else {
    }
    %c3_i32 = arith.constant 3 : i32
    %41 = arith.cmpi eq, %arg1, %c3_i32 : i32
    %42 = arith.extui %41 : i1 to i32
    %c0_i32_24 = arith.constant 0 : i32
    %43 = arith.cmpi ne, %42, %c0_i32_24 : i32
    scf.if %43 {
      %44 = arith.index_cast %4 : i32 to index
      %c0_25 = arith.constant 0 : index
      %45 = vector.load %arg14[%44, %c0_25] : memref<8x32xf32, #tpu.memory_space<vmem>>, vector<8x32xf32>
      %c0_26 = arith.constant 0 : index
      %c0_27 = arith.constant 0 : index
      %46 = vector.load %arg10[%c0_26, %c0_27] : memref<1x32xf32, #tpu.memory_space<vmem>>, vector<1x32xf32>
      %47 = vector.broadcast %46 : vector<1x32xf32> to vector<8x32xf32>
      %48 = arith.addf %45, %47 : vector<8x32xf32>
      %c0_28 = arith.constant 0 : index
      %49 = arith.index_cast %4 : i32 to index
      %c0_29 = arith.constant 0 : index
      %50 = vector.load %arg11[%c0_28, %49, %c0_29] : memref<1x8x32xf32, #tpu.memory_space<vmem>>, vector<1x8x32xf32>
      %51 = vector.shape_cast %50 : vector<1x8x32xf32> to vector<8x32xf32>
      %52 = vector.shape_cast %48 : vector<8x32xf32> to vector<1x8x32xf32>
      tpu.vector_store %arg11[%c0_28, %49, %c0_29], %52 {strides = array<i32>} : memref<1x8x32xf32, #tpu.memory_space<vmem>>, vector<1x8x32xf32>,
    } else {
    }
    return
  }
  func.func @transform_0(%arg0: i32, %arg1: i32, %arg2: i32) -> (i32, i32, i32) {
    %c0_i32 = arith.constant 0 : i32
    %c0_i32_0 = arith.constant 0 : i32
    %c0_i32_1 = arith.constant 0 : i32
    return %arg0, %c0_i32, %c0_i32_0 : i32, i32, i32
  }
  func.func @transform_1(%arg0: i32, %arg1: i32, %arg2: i32) -> (i32, i32, i32) {
    %c0_i32 = arith.constant 0 : i32
    %c0_i32_0 = arith.constant 0 : i32
    %c0_i32_1 = arith.constant 0 : i32
    return %arg1, %c0_i32, %c0_i32_0 : i32, i32, i32
  }
  func.func @transform_2(%arg0: i32, %arg1: i32, %arg2: i32) -> (i32, i32, i32) {
    %c0_i32 = arith.constant 0 : i32
    %c0_i32_0 = arith.constant 0 : i32
    %c0_i32_1 = arith.constant 0 : i32
    return %arg1, %c0_i32, %c0_i32_0 : i32, i32, i32
  }
  func.func @transform_3(%arg0: i32, %arg1: i32, %arg2: i32) -> (i32, i32, i32) {
    %c0_i32 = arith.constant 0 : i32
    %c0_i32_0 = arith.constant 0 : i32
    %c0_i32_1 = arith.constant 0 : i32
    return %arg1, %c0_i32, %c0_i32_0 : i32, i32, i32
  }
  func.func @transform_4(%arg0: i32, %arg1: i32, %arg2: i32) -> (i32, i32, i32) {
    %c0_i32 = arith.constant 0 : i32
    %c0_i32_0 = arith.constant 0 : i32
    %c0_i32_1 = arith.constant 0 : i32
    return %arg1, %c0_i32, %c0_i32_0 : i32, i32, i32
  }
  func.func @transform_5(%arg0: i32, %arg1: i32, %arg2: i32) -> (i32, i32, i32) {
    %c0_i32 = arith.constant 0 : i32
    %c0_i32_0 = arith.constant 0 : i32
    %c0_i32_1 = arith.constant 0 : i32
    return %arg1, %c0_i32, %c0_i32_0 : i32, i32, i32
  }
  func.func @transform_6(%arg0: i32, %arg1: i32, %arg2: i32) -> (i32, i32, i32) {
    %c0_i32 = arith.constant 0 : i32
    %c0_i32_0 = arith.constant 0 : i32
    %c0_i32_1 = arith.constant 0 : i32
    return %arg1, %c0_i32, %c0_i32_0 : i32, i32, i32
  }
  func.func @transform_7(%arg0: i32, %arg1: i32, %arg2: i32) -> (i32, i32) {
    %c0_i32 = arith.constant 0 : i32
    %c0_i32_0 = arith.constant 0 : i32
    %c0_i32_1 = arith.constant 0 : i32
    return %c0_i32, %c0_i32_0 : i32, i32
  }
  func.func @transform_8(%arg0: i32, %arg1: i32, %arg2: i32) -> (i32, i32, i32) {
    %c0_i32 = arith.constant 0 : i32
    %c0_i32_0 = arith.constant 0 : i32
    %c0_i32_1 = arith.constant 0 : i32
    return %arg0, %c0_i32, %c0_i32_0 : i32, i32, i32
  }
}

</mosaic_0001>

<bundles_post_ra>
// kernel: tpu_custom_call.1
= control target key start
LH: loop header
LB: loop body
LE: loop exit
PB: predicated region body
PF: predicated region fallthrough
CT: control target
= control target key end

     0   :  { %13 = vsyncpa [#allocation6], 0  ;;  %s1507_s0 = inlined_call_operand.vmem [shape: bf16[2,8,32], index: 0, kind: input, shape index: {}]   ;;  %s1508_s1 = inlined_call_operand.vmem [shape: bf16[4,32,8], index: 1, kind: input, shape index: {}]   ;;  %s1509_s2 = inlined_call_operand.vmem [shape: f32[4,1,8], index: 2, kind: input, shape index: {}]   ;;  %s1510_s3 = inlined_call_operand.vmem [shape: bf16[4,32,8], index: 3, kind: input, shape index: {}]   ;;  %s1511_s4 = inlined_call_operand.vmem [shape: bf16[4,32,8], index: 4, kind: input, shape index: {}]   ;;  %s1512_s5 = inlined_call_operand.vmem [shape: f32[4,1,8], index: 5, kind: input, shape index: {}]   ;;  %s1513_s6 = inlined_call_operand.vmem [shape: bf16[4,8,32], index: 6, kind: input, shape index: {}]   ;;  %s1514_s7 = inlined_call_operand.vmem [shape: f32[1,32], index: 7, kind: input, shape index: {}]   ;;  %s1515_s8 = inlined_call_operand.hbm [shape: f32[2,8,32], index: 8, kind: output, shape index: {}]  }
   0x1   :  { %15 = vsyncpa [#allocation6 + $0x1], 0  ;;  %s1305_s27 = smov 0   ;;  %s1307_s28 = smov 0  }
   0x2   :  { %s1309_s29 = smov 0   ;;  %s1311_s30 = smov 0  }
   0x3   :  { %s1313_s9 = smov 0   ;;  %s1315_s10 = smov 0  }
   0x4   :  { %s1317_s11 = smov 0   ;;  %s1319_s12 = smov 0  }
   0x5 LB: > { %1523 = sst [smem:[#allocation8_spill]] %s1227_s27  ;;  %s982_s13 = sadd.s32 4294967295, %s1255_s12   ;;  %s1255_s12 = sphi %s1319_s12, %s21_s12   ;;  %s1251_s11 = sphi %s1317_s11, %s1541_s11   ;;  %s1247_s10 = sphi %s1315_s10, %s1540_s10   ;;  %s1243_s9 = sphi %s1313_s9, %s1539_s9   ;;  %s1239_s30 = sphi %s1311_s30, %s1538_s30   ;;  %s1235_s29 = sphi %s1309_s29, %s1537_s29   ;;  %s1231_s28 = sphi %s1307_s28, %s1543_s28   ;;  %s1227_s27 = sphi %s1305_s27, %s1542_s27  }
   0x6   : > { %1524 = sst [smem:[#allocation9_spill]] %s1235_s29  ;;  %s983_s14 = sadd.s32 4294967294, %s1255_s12  }
   0x7   : > { %1525 = sst [smem:[#allocation10_spill]] %s1247_s10  ;;  %s36_s15 = sadd.s32 1, %s1247_s10 }
   0x8   : > { %1526 = sst [smem:[#allocation11_spill]] %s1251_s11  ;;  %p38_p0 = scmp.ge.s32.totalorder %s36_s15, 4 }
   0x9   : > { %s40_s16 = sadd.s32 1, %s1251_s11  ;;  %p260_p1 = scmp.ne.s32.totalorder %s1235_s29, %s1231_s28 }
   0xa   : > { %p261_p2 = scmp.eq.s32.totalorder %s982_s13, 7  ;;  %s1545_s15 = smov (%p38_p0, %s36_s15), 0 }
   0xb   : > { %1527 = sst [smem:[#allocation12_spill]] %s1545_s15  ;;  %s1547_s16 = smov (!%p38_p0, %s40_s16), %s1251_s11 }
   0xc   : > { %p1354_p3 = por %p261_p2, %p260_p1  ;;  %p266_p4 = scmp.ne.s32.totalorder %s1231_s28, %s1227_s27 }
   0xd   : > { %p42_p5 = scmp.ge.s32.totalorder %s1547_s16, 2  ;;  %p267_p6 = scmp.eq.s32.totalorder %s983_s14, 7 }
   0xe   : > { %p986_p7 = scmp.ge.s32.totalorder %s1255_s12, 1  ;;  %p338_p8 = scmp.lt.s32.totalorder %s1255_s12, 9 }
   0xf   : > { %s1549_s16 = smov (%p42_p5, %s1547_s16), 0  ;;  %p1364_p9 = por %p267_p6, %p266_p4 }
  0x10   : > { %1529 = sst [smem:[#allocation13_spill]] %s1549_s16  ;;  %p339_p10 = pnand %p986_p7, %p338_p8 }
  0x11   : > { %s1530_s18 = scalar_select %p1364_p9, 1, 0 }
  0x12   : > { %s247_s19 = ssub.s32 %s1251_s11, %s1549_s16  ;;  %s250_s20 = sadd.s32 1, %s1235_s29  ;;  %v1257_v0 = vmov (!%p339_p10), 0.0   ;;  %vm1258_vm0 = vmmov (!%p339_p10), 0   ;;  %vm447_vm1 = vcmask (!%p339_p10), 261120   ;;  %vm555_vm2 = vcmask (!%p339_p10), 60416  }
  0x13   : > { %1531 = sst [smem:[#allocation14_spill]] %s1530_s18  ;;  %p248_p11 = scmp.eq.s32.totalorder %s247_s19, 0  ;;  %1036 = vmatprep.subr.bf16.mxu0 (!%p339_p10), %v1257_v0  ;;  %1040 = vmatprep.mubr.msk.bf16.mxu0 (!%p339_p10), %vm1258_vm0, %v1257_v0  ;;  %vm634_vm3 = vcmask (!%p339_p10), 64512   ;;  %vm695_vm4 = vcmask (!%p339_p10), 1043456  }
  0x14   : > { %342 = sbr.rel (%p339_p10) target bundleno = 1115 (0x45b), region = 52  ;;  %s1516_s22 = sand.u32 (!%p339_p10), 1, %s1231_s28   ;;  %1044 = vmatprep.subr.bf16.mxu1 (!%p339_p10), %v1257_v0  ;;  %1048 = vmatprep.mubr.msk.bf16.mxu1 (!%p339_p10), %vm1258_vm0, %v1257_v0 }
  0x15   : > { %s1372_s21 = scalar_select %p248_p11, %s1235_s29, %s250_s20  }
  0x16   : > { %p400_p12 = scmp.lt.s32.totalorder (!%p339_p10), %s1239_s30, 3  ;;  %s1378_s23 = sshll.u32 (!%p339_p10), %s1516_s22, 3 }
  0x17   : > { %1532 = sst [smem:[#allocation15_spill]] %s1372_s21  ;;  %p396_p13 = scmp.lt.s32.totalorder (!%p339_p10), %s1243_s9, 1 }
  0x18   : > { %p1010_p0 = scmp.ne.s32.totalorder (!%p339_p10), %s1239_s30, 0 }
  0x1b   : > { %s1388_s24 = scalar_select %p400_p12, %s1239_s30, 3 }
  0x1c   : > { %s397_s25 = scalar_select %p396_p13, %s1243_s9, 1 }
  0x1d   : > { %s1018_s26 = sshll.u32 %s1388_s24, 4  ;;  %s407_s10 = scalar_lea.vmem %s1509_s2, %s1388_s24 }
  0x1e   : > { %s412_s19 = scalar_lea.vmem %s1510_s3, %s1018_s26  ;;  %s988_s20 = sshll.u32 %s397_s25, 2  ;;  %v1003_v14 = vld [vmem:[%s407_s10] ss:$0 sm:$0xff] }
  0x1f   : > { %v1151_v1 = vld [vmem:[%s412_s19] sm:$0xff]   ;;  %s404_s15 = scalar_lea.vmem %s1508_s1, %s1018_s26  ;;  %v1152_v2 = vld [vmem:[%s412_s19 + $0x8] sm:$0xff]   ;;  %s417_s21 = scalar_lea.vmem %s1511_s4, %s1018_s26 }
  0x20   : > { %1037 = vmatpush3.bf16.msra.mxu0 %v1151_v1  ;;  %s399_s27 = scalar_lea.vmem %s1507_s0, %s988_s20  ;;  %v1155_v3 = vld [vmem:[%s417_s21] sm:$0xff]   ;;  %v1154_v6 = vld [vmem:[%s404_s15 + $0x8] sm:$0xff]   ;;  %s420_s16 = scalar_lea.vmem %s1512_s5, %s1388_s24 }
  0x21   : > { %1038 = vmatprep.subr.bf16.mxu0 %v1257_v0  ;;  %v430_v4 = vld [vmem:[%s399_s27] sm:$0xf]  ;;  %1045 = vmatpush3.bf16.msra.mxu1 %v1155_v3  ;;  %v1156_v8 = vld [vmem:[%s417_s21 + $0x8] sm:$0xff]   ;;  %s995_s18 = sshll.u32 %s1388_s24, 2  ;;  %s395_s24 = scalar_lea.vmem [#allocation5], %s1378_s23 }
  0x22   : > { %v1153_v5 = vld [vmem:[%s404_s15] sm:$0xff]   ;;  %1046 = vmatprep.subr.bf16.mxu1 %v1257_v0  ;;  %s424_s25 = scalar_lea.vmem %s1513_s6, %s995_s18 }
  0x23   : > { %v564_v7 = vld [vmem:[%s399_s27] sm:$0xf] }
  0x24   : > { %1039 = vmatpush3.bf16.msra.mxu0 %v1152_v2  ;;  %v999_v23 = vld [vmem:[%s420_s16] ss:$0 sm:$0xff] }
  0x25   : > { %1052 = vmatprep.subr.bf16.mxu0 %v1257_v0  ;;  %1047 = vmatpush3.bf16.msra.mxu1 %v1156_v8  ;;  %v742_v43 = vld [vmem:[%s424_s25] sm:$0xf] }
  0x26   : > { %1060 = vmatprep.subr.bf16.mxu1 %v1257_v0  ;;  %v747_v44 = vsel %vm695_vm4, %v742_v43, 0 }
  0x27   : > { %1041 = vmatmul.mubr.msk.bf16.vlgmr.msra.gmra.mrb[0].mxu0 %vm447_vm1, %v430_v4 }
  0x28   : > { %1053 = vmatpush3.bf16.msra.mxu0 %v1153_v5  ;;  %1056 = vmatprep.mubr.msk.bf16.mxu0 %vm1258_vm0, %v1257_v0 }
  0x29   : > { %1054 = vmatprep.subr.bf16.mxu0 %v1257_v0  ;;  %1049 = vmatmul.mubr.msk.bf16.vlgmr.msra.gmra.mrb[0].mxu1 %vm447_vm1, %v430_v4 }
  0x2a   : > { %1062 = vmatprep.mubr.msk.bf16.mxu1 %vm1258_vm0, %v1257_v0 }
  0x2c   : > { %1055 = vmatpush3.bf16.msra.mxu0 %v1154_v6 }
  0x2d   : > { %1066 = vmatprep.subr.bf16.mxu0 %v1257_v0 }
  0x2f   : > { %1057 = vmatmul.mubr.msk.bf16.vlgmr.msra.gmra.mrb[4].mxu0 %vm447_vm1, %v564_v7 }
  0x30   : > { %1068 = vmatprep.mubr.msk.bf16.mxu0 %vm1258_vm0, %v1257_v0 }
  0xfa   : > { %v485_v9 = vpop.f32.mrb[0].mxu0 }
  0xfb   : > { %v554_v10 = vpack.c.bf16 %v485_v9, %v485_v9  ;;  %v1042_v11 = vpop.f32.mrb[1].mxu0 }
  0xfc   : > { %v488_v12 = vpop.f32.mrb[2].mxu0  ;;  %v548_v24 = vpop.f32.mrb[0].mxu1 }
  0xfd   : > { %556 = vst.msk [vmem:[#allocation2] sm:$0xf] %vm555_vm2, %v554_v10  ;;  %v1043_v13 = vpop.f32.mrb[3].mxu0  ;;  %v549_v25 = vadd.f32 %v999_v23, %v548_v24  ;;  %v1050_v26 = vpop.f32.mrb[1].mxu1 }
  0xfe   : > { %v551_v27 = vpop.f32.mrb[2].mxu1 }
  0xff   : > { %v557_v28 = vpack.c.bf16 %v549_v25, %v549_v25  ;;  %v1051_v29 = vpop.f32.mrb[3].mxu1 }
 0x101   : > { %558 = vst.msk [vmem:[#allocation3] sm:$0xf] %vm555_vm2, %v557_v28 }
 0x102   : > { %v626_v15 = vpop.f32.mrb[4].mxu0 }
 0x103   : > { %v1058_v16 = vpop.f32.mrb[5].mxu0  ;;  %v627_v19 = vadd.f32 %v1003_v14, %v626_v15 }
 0x104   : > { %v633_v17 = vld [vmem:[#allocation2] sm:$0xf]  ;;  %v629_v18 = vpop.f32.mrb[6].mxu0 }
 0x105   : > { %v639_v20 = vsel %vm634_vm3, %v633_v17, 0  ;;  %v1059_v21 = vpop.f32.mrb[7].mxu0  ;;  %v632_v22 = vpack.c.bf16 %v627_v19, %v627_v19 }
 0x106   : > { %1061 = vmatpush3.bf16.xpose.msra.mxu1 %v639_v20 }
 0x107   : > { %1072 = vmatprep.subr.bf16.mxu1 %v1257_v0 }
 0x108   : > { %v691_v30 = vld [vmem:[#allocation3] sm:$0xf] }
 0x109   : > { %v697_v31 = vsel %vm695_vm4, %v691_v30, 0 }
 0x10a   : > { %1067 = vmatpush3.bf16.msra.mxu0 %v697_v31 }
 0x10d   : > { %1063 = vmatmul.mubr.msk.bf16.vlgmr.msra.gmra.mrb[4].mxu1 %vm634_vm3, %v632_v22 }
 0x10e   : > { %1074 = vmatprep.mubr.msk.bf16.mxu1 %vm1258_vm0, %v1257_v0  ;;  %1073 = vmatpush3.bf16.msra.mxu1 %v747_v44 }
 0x1e0   : > { %v675_v32 = vpop.f32.mrb[4].mxu1 }
 0x1e1   : > { %v1064_v33 = vpop.f32.mrb[5].mxu1  ;;  %v681_v34 = vsel %vm634_vm3, %v675_v32, -inf }
 0x1e2   : > { %682 = vmax.xlane.f32.xlu0 %v681_v34  ;;  %v678_v35 = vpop.f32.mrb[6].mxu1 }
 0x1e3   : > { %v1065_v36 = vpop.f32.mrb[7].mxu1 }
 0x26f   : > { %v683_v37 = vpop.xlane.xlu0 %682 }
 0x270   : > { %v684_v38 = vsub.f32 %v675_v32, %v683_v37 }
 0x272   : > { %v685_v39 = vmul.f32 1.442695, %v684_v38 }
 0x274   : > { %1157 = vpow2.f32 %v685_v39 }
 0x27e   : > { %v1158_v40 = vpop.eup %1157 }
 0x27f   : > { %v687_v41 = vsel %vm634_vm3, %v1158_v40, 0.0  ;;  %v690_v42 = vpack.c.bf16 %v1158_v40, %v1158_v40 }
 0x280   : > { %688 = vadd.xlane.f32.xlu0 %v687_v41 }
 0x281   : > { %1069 = vmatmul.mubr.msk.bf16.vlgmr.msra.gmra.mrb[8].mxu0 %vm634_vm3, %v690_v42 }
 0x30d   : > { %v689_v45 = vpop.xlane.xlu0 %688 }
 0x30e   : > { %1159 = vrcp.f32 %v689_v45 }
 0x318   : > { %v1160_v46 = vpop.eup %1159 }
 0x354   : > { %v733_v47 = vpop.f32.mrb[8].mxu0 }
 0x355   : > { %v740_v48 = vmul.f32 %v1160_v46, %v733_v47  ;;  %v1070_v49 = vpop.f32.mrb[9].mxu0 }
 0x356   : > { %v736_v50 = vpop.f32.mrb[10].mxu0 }
 0x357   : > { %v741_v51 = vpack.c.bf16 %v740_v48, %v740_v48  ;;  %v1071_v52 = vpop.f32.mrb[11].mxu0 }
 0x359   : > { %1075 = vmatmul.mubr.msk.bf16.vlgmr.msra.gmra.mrb[8].mxu1 %vm634_vm3, %v741_v51 }
 0x429   : > { %792 = sbr.rel (%p1010_p0) target bundleno = 1072 (0x430), region = 60 }
 0x42c   : > { %v783_v53 = vpop.f32.mrb[8].mxu1 }
 0x42d   : > { %v1076_v54 = vpop.f32.mrb[9].mxu1  ;;  %794 = vst.msk [vmem:[#allocation4] sm:$0xff] (!%p1010_p0), %vm447_vm1, %v783_v53 }
 0x42e   : > { %v786_v55 = vpop.f32.mrb[10].mxu1 }
 0x42f   : > { %v1077_v56 = vpop.f32.mrb[11].mxu1 }
 0x430 PF: > { %p1011_p1 = scmp.le.s32.totalorder %s1239_s30, 0 }
 0x432   : > { %798 = sbr.rel (%p1011_p1) target bundleno = 1081 (0x439), region = 64 }
 0x434   : > { %v800_v57 = vld [vmem:[#allocation4] sm:$0xff] (!%p1011_p1) }
 0x435   : > { %v801_v58 = vadd.f32 (!%p1011_p1), %v800_v57, %v783_v53 }
 0x437   : > { %802 = vst.msk [vmem:[#allocation4] sm:$0xff] (!%p1011_p1), %vm447_vm1, %v801_v58 }
 0x439 PF: > { %p1012_p2 = scmp.ne.s32.totalorder %s1239_s30, 3 }
 0x43a   : > { %v1013_v60 = vld [vmem:[%s1514_s7] ss:$0 sm:$0xff] (!%p1012_p2) }
 0x43b   : > { %806 = sbr.rel (%p1012_p2) target bundleno = 1090 (0x442), region = 68 }
 0x43e   : > { %v808_v59 = vld [vmem:[#allocation4] sm:$0xff] (!%p1012_p2) }
 0x43f   : > { %v816_v61 = vadd.f32 (!%p1012_p2), %v1013_v60, %v808_v59 }
 0x441   : > { %818 = vst.msk [vmem:[%s395_s24] sm:$0xff] (!%p1012_p2), %vm447_vm1, %v816_v61 }
 0x442 PF: > { %s1015_s13 = sshll.u32 %s1243_s9, 7  ;;  %s833_s30 = sshll.u32 %s395_s24, 4  ;;  %s834_s30 = int_to_ptr.vmem [resolvable:$true] %s833_s30 }
 0x443   : > { %s1458_s20 = scalar_lea.hbm %s1515_s8, %s1015_s13  ;;  %s1533_s27 = sand.u32 1, %s1231_s28  }
 0x444   : > { %s820_s29 = scalar_lea.sflag [#allocation6], %s1533_s27  ;;  %s1161_s10 = scalar_lea.vmem %s834_s30, 128 }
 0x445   : > { %p1162_p4 = scmp.ne.s32.totalorder %s834_s30, %s1161_s10  ;;  %s1259_s11 = smov [#allocation5]  }
 0x446   : > { %s1165_s15 = sshll.u32 %s1259_s11, 4  ;;  %s1166_s15 = int_to_ptr.vmem [resolvable:$false] %s1165_s15 }
 0x447   : > { %p1163_p5 = pnand %p1162_p4, %p1354_p3  ;;  %s1167_s16 = scalar_lea.vmem %s1166_s15, 256 }
 0x448   : > { %p1168_p7 = scmp.lt.s32.totalorder %s834_s30, %s1166_s15  ;;  %p1169_p8 = scmp.lt.s32.totalorder %s1167_s16, %s1161_s10 }
 0x449   : > { %p1164_p6 = pneg %p1163_p5 }
 0x44a   : > { %p1170_p10 = por %p1169_p8, %p1168_p7 }
 0x44c   : > { %p1171_p11 = pnand %p1170_p10, %p1164_p6 }
 0x44e   : > { %1174 = shalt.err (!%p1171_p11)
}
 0x44f   : > { %s1175_s9 = scalar_lea.hbm %s1458_s20, 128  ;;  %s1179_s22 = scalar_lea.hbm %s1515_s8, 256 }
 0x450   : > { %p1176_p12 = scmp.ne.s32.totalorder %s1458_s20, %s1175_s9  ;;  %p1180_p1 = scmp.lt.u32.totalorder %s1458_s20, %s1515_s8 }
 0x451   : > { %p1181_p2 = scmp.lt.u32.totalorder %s1179_s22, %s1175_s9  ;;  %p1183_p5 = scmp.lt.u32.totalorder %s1175_s9, %s1458_s20 }
 0x452   : > { %p1177_p13 = pnand %p1176_p12, %p1354_p3 }
 0x453   : > { %p1182_p4 = por %p1181_p2, %p1180_p1 }
 0x454   : > { %p1178_p0 = pneg %p1177_p13 }
 0x455   : > { %p1184_p6 = por %p1183_p5, %p1182_p4 }
 0x457   : > { %p1185_p7 = pnand %p1184_p6, %p1178_p0 }
 0x459   : > { %1188 = shalt.err (!%p1185_p7)
}
 0x45a   : > { %1078 = dma.vmem_to_hbm [thread:$0]  (%p1354_p3), %s834_s30, 128, %s1458_s20, %s820_s29  }
 0x45b PF: > { %s1534_s26 = sld [smem:[#allocation8_spill]]  ;;  %p1084_p8 = scmp.ge.s32.totalorder %s1255_s12, 2 }
 0x45d   : > { %p1081_p10 = pnand %p1084_p8, %p1364_p9 }
 0x461   : > { %s845_s13 = sand.u32 1, %s1534_s26  }
 0x462   : > { %s846_s14 = scalar_lea.sflag [#allocation6], %s845_s13 }
 0x463   : > { %1222 = dma.done.wait (!%p1081_p10), %s846_s14, 128  }
 0x464   : > { %1224 = vsyncadd (!%p1081_p10), %s846_s14, 4294967168  ;;  %s21_s12 = sadd.s32 1, %s1255_s12   ;;  %s1536_s19 = sld [smem:[#allocation9_spill]] }
 0x465   : > { %p18_p11 = scmp.ge.s32.totalorder %s21_s12, 10   ;;  %s1537_s29 = sld [smem:[#allocation15_spill]] }
 0x466   : > { %s1538_s30 = sld [smem:[#allocation10_spill]]  ;;  %s1539_s9 = sld [smem:[#allocation11_spill]] }
 0x467   : > { %s1540_s10 = sld [smem:[#allocation12_spill]]  ;;  %s1541_s11 = sld [smem:[#allocation13_spill]] }
 0x468   : > { %s1542_s27 = smov %s1231_s28  ;;  %20 = sbr.rel (!%p18_p11) target bundleno = 5 (0x5), region = 126 }
 0x46a   : > { %s1543_s28 = smov %s1536_s19 }
 0x46f   :  { %851 = vsyncpa [#allocation6], 1 }
 0x470   :  { %853 = vsyncpa [#allocation6 + $0x1], 1 }

</bundles_post_ra>
